<compile_context>
chip_gen: v5e
topology: v5e:2x2
jax: 0.10.0
libtpu: 0.0.40
codegen_flags: <defaults>
</compile_context>

<pallas_src>
import functools

import jax
import jax.numpy as jnp
from jax.experimental import pallas as pl
from jax.experimental.pallas import tpu as pltpu


def _round_up(x, m):
    return ((x + m - 1) // m) * m


def _vmem_budget_and_limit():
    """(tile budget bytes, vmem_limit_bytes) sized per TPU generation."""
    cap = None
    try:
        cap = int(getattr(pltpu.get_tpu_info(), "vmem_capacity_bytes"))
    except Exception:
        cap = None
    if cap is None or cap <= 0:
        cap = 64 * 1024 * 1024                 # conservative: v7x per-TC VMEM
    if cap >= 100 * 1024 * 1024:               # v5e / v6e (128 MiB physical)
        return 48 * 1024 * 1024, 96 * 1024 * 1024
    return 20 * 1024 * 1024, 32 * 1024 * 1024  # v7x (64 MiB physical)


def _choose_tiles(n, c, itemsize, budget):
    """Pick (tile_n, tile_c).  tile_c == round_up(c,128) selects the full-C path."""
    c_pad = _round_up(c, 128)                  # lane padding of the (TILE_N, C) block

    def row_bytes(cols):
        # 2x double-buffered native-dtype input + f32 intermediates
        # (shifted tile, exp tile, int32 col iota) + per-row (N,1) vectors.
        return cols * (2 * itemsize + 12) + 2048

    if row_bytes(c_pad) * 128 <= budget:       # full-C row tile affords >= 128 rows
        tile_c = c_pad
    else:                                      # vocab-sized C -> online logsumexp
        tile_c = min(c_pad, 2048)
    rows = budget // row_bytes(tile_c)
    rows = max(8, min(int(rows), 8192))
    rows = min(rows, _round_up(n, 8))
    if n > 8:
        # Guarantee >= 2 row tiles so the "parallel" axis can use both v7x cores.
        rows = min(rows, _round_up(pl.cdiv(n, 2), 8))
    return max(8, (rows // 8) * 8), tile_c


def _soft_ce_fullc_kernel(logits_ref, target_ref, out_ref, *, n_rows, tile_n):
    """One (TILE_N, C) row tile per grid step; full C in lanes."""
    i = pl.program_id(0)
    x = logits_ref[...].astype(jnp.float32)                 # (TILE_N, C)
    t = target_ref[...]                                     # (TILE_N, 1) i32

    m = jnp.max(x, axis=1, keepdims=True)                   # per-row max
    xm = x - m                                              # raw x retires here
    sum_e = jnp.sum(jnp.exp(xm), axis=1, keepdims=True)     # (TILE_N, 1)

    # Gather target-class (shifted) logit with a lane compare; no one-hot tensor.
    col = jax.lax.broadcasted_iota(jnp.int32, xm.shape, 1)
    picked_m = jnp.sum(jnp.where(col == t, xm, 0.0), axis=1, keepdims=True)

    # Only per-row padded-row masking is needed: reductions above never mix rows.
    row = jax.lax.broadcasted_iota(jnp.int32, (tile_n, 1), 0) + i * tile_n
    valid = row < n_rows
    nll = jnp.where(valid, jnp.log(sum_e) - picked_m, 0.0)

    out_ref[...] = jnp.broadcast_to(jnp.sum(nll), out_ref.shape)


def _soft_ce_ctiled_kernel(logits_ref, target_ref, out_ref, m_sc, s_sc, p_sc,
                           *, n_rows, n_cols, tile_n, tile_c):
    """(TILE_N, TILE_C) blocks; online logsumexp over the C ("arbitrary") axis."""
    i = pl.program_id(0)
    j = pl.program_id(1)

    @pl.when(j == 0)
    def _():
        m_sc[...] = jnp.full(m_sc.shape, -jnp.inf, jnp.float32)
        s_sc[...] = jnp.zeros(s_sc.shape, jnp.float32)
        p_sc[...] = jnp.zeros(p_sc.shape, jnp.float32)

    x = logits_ref[...].astype(jnp.float32)                 # (TILE_N, TILE_C)
    t = target_ref[...]                                     # (TILE_N, 1) i32

    col = jax.lax.broadcasted_iota(jnp.int32, x.shape, 1) + j * tile_c
    xv = jnp.where(col < n_cols, x, -jnp.inf)               # scrub padded columns only

    m_old = m_sc[...]
    m_new = jnp.maximum(m_old, jnp.max(xv, axis=1, keepdims=True))
    s_sc[...] = s_sc[...] * jnp.exp(m_old - m_new) + \
        jnp.sum(jnp.exp(xv - m_new), axis=1, keepdims=True)
    m_sc[...] = m_new

    # Accumulate the (unshifted) target-class logit.
    p_sc[...] += jnp.sum(jnp.where(col == t, x, 0.0), axis=1, keepdims=True)

    @pl.when(j == pl.num_programs(1) - 1)
    def _():
        row = jax.lax.broadcasted_iota(jnp.int32, (tile_n, 1), 0) + i * tile_n
        valid = row < n_rows
        nll = jnp.where(valid, m_sc[...] + jnp.log(s_sc[...]) - p_sc[...], 0.0)
        out_ref[...] = jnp.broadcast_to(jnp.sum(nll), out_ref.shape)


def soft_cross_entropy_loss(logits, target, tile_n=None, tile_c=None):
    """logits: [N, C] float (any float dtype), target: [N] int -> scalar f32 loss.

    tile_c (if given and < C) must be a multiple of 128.
    """
    n, c = logits.shape
    itemsize = jnp.dtype(logits.dtype).itemsize
    budget, vmem_limit = _vmem_budget_and_limit()

    auto_tile_n, auto_tile_c = _choose_tiles(n, c, itemsize, budget)
    if tile_n is None:
        tile_n = auto_tile_n
    if tile_c is None:
        tile_c = auto_tile_c

    c_pad = _round_up(c, 128)
    num_row_tiles = pl.cdiv(n, tile_n)
    target2d = target.astype(jnp.int32).reshape(n, 1)
    out_shape = jax.ShapeDtypeStruct((num_row_tiles, 8, 128), jnp.float32)

    if tile_c >= c_pad or tile_c >= c:
        # Fast path: full-C row tiles streamed through the auto DMA pipeline.
        kernel = functools.partial(_soft_ce_fullc_kernel, n_rows=n, tile_n=tile_n)
        partials = pl.pallas_call(
            kernel,
            out_shape=out_shape,
            grid=(num_row_tiles,),
            in_specs=[
                pl.BlockSpec((tile_n, c), lambda i: (i, 0)),
                pl.BlockSpec((tile_n, 1), lambda i: (i, 0)),
            ],
            out_specs=pl.BlockSpec((1, 8, 128), lambda i: (i, 0, 0)),
            compiler_params=pltpu.CompilerParams(
                dimension_semantics=("parallel",),
                vmem_limit_bytes=vmem_limit,
            ),
        )(logits, target2d)
    else:
        # Large-C path: second grid axis over C with online logsumexp.
        num_col_tiles = pl.cdiv(c, tile_c)
        kernel = functools.partial(
            _soft_ce_ctiled_kernel, n_rows=n, n_cols=c, tile_n=tile_n, tile_c=tile_c)
        partials = pl.pallas_call(
            kernel,
            out_shape=out_shape,
            grid=(num_row_tiles, num_col_tiles),
            in_specs=[
                pl.BlockSpec((tile_n, tile_c), lambda i, j: (i, j)),
                pl.BlockSpec((tile_n, 1), lambda i, j: (i, 0)),
            ],
            out_specs=pl.BlockSpec((1, 8, 128), lambda i, j: (i, 0, 0)),
            scratch_shapes=[
                pltpu.VMEM((tile_n, 1), jnp.float32),   # running row max
                pltpu.VMEM((tile_n, 1), jnp.float32),   # running sum of exp
                pltpu.VMEM((tile_n, 1), jnp.float32),   # target logit accumulator
            ],
            compiler_params=pltpu.CompilerParams(
                dimension_semantics=("parallel", "arbitrary"),
                vmem_limit_bytes=vmem_limit,
            ),
        )(logits, target2d)

    # Tiny final reduction over per-tile partial sums in the wrapper.
    return jnp.sum(partials[:, 0, 0]) * (1.0 / n)


def _reference(logits, target):
    lp = jax.nn.log_softmax(logits.astype(jnp.float32), axis=1)
    nll = -jnp.take_along_axis(lp, target.astype(jnp.int32)[:, None], axis=1)
    return jnp.mean(nll)


if __name__ == "__main__":
    key = jax.random.PRNGKey(0)
    k1, k2, k3, k4, k5, k6 = jax.random.split(key, 6)

    # 1) Small single-tile f32 case (auto tiling, full-C path).
    n1, c1 = 8, 32
    logits1 = jax.random.normal(k1, (n1, c1), dtype=jnp.float32)
    target1 = jax.random.randint(k2, (n1,), 0, c1, dtype=jnp.int32)
    loss1 = soft_cross_entropy_loss(logits1, target1)
    jax.block_until_ready(loss1)
    ref1 = _reference(logits1, target1)
    assert jnp.allclose(loss1, ref1, rtol=1e-5, atol=1e-5), (loss1, ref1)

    # 2) Multi-tile with partial (masked) last row tile; bf16 streamed natively.
    n2, c2 = 20, 160
    logits2 = jax.random.normal(k3, (n2, c2), dtype=jnp.float32).astype(jnp.bfloat16)
    target2 = jax.random.randint(k4, (n2,), 0, c2, dtype=jnp.int32)
    loss2 = soft_cross_entropy_loss(logits2, target2, tile_n=8)
    jax.block_until_ready(loss2)
    ref2 = _reference(logits2, target2)
    assert jnp.allclose(loss2, ref2, rtol=1e-4, atol=1e-4), (loss2, ref2)

    # 3) C-tiled online-logsumexp path: partial last row tile AND partial last
    #    column tile (C not a multiple of tile_c).
    n3, c3 = 20, 300
    logits3 = jax.random.normal(k5, (n3, c3), dtype=jnp.float32)
    target3 = jax.random.randint(k6, (n3,), 0, c3, dtype=jnp.int32)
    loss3 = soft_cross_entropy_loss(logits3, target3, tile_n=16, tile_c=128)
    jax.block_until_ready(loss3)
    ref3 = _reference(logits3, target3)
    assert jnp.allclose(loss3, ref3, rtol=1e-5, atol=1e-5), (loss3, ref3)

    print("KERNEL_OK")
</pallas_src>

<mosaic_0001>
module attributes {stable_mosaic.version = 11 : i64} {
  func.func @_soft_ce_fullc_kernel(%arg0: i32, %arg1: memref<8x32xf32, #tpu.memory_space<vmem>>, %arg2: memref<8x1xi32, #tpu.memory_space<vmem>>, %arg3: memref<1x8x128xf32, #tpu.memory_space<vmem>>) attributes {dimension_semantics = [#tpu.dimension_semantics<parallel>], iteration_bounds = array<i64: 1>, scalar_prefetch = 0 : i64, scratch_operands = 0 : i64, tpu.core_type = #tpu.core_type<tc>, window_params = [{transform_indices = @transform_0, window_bounds = array<i64: 8, 32>}, {transform_indices = @transform_1, window_bounds = array<i64: 8, 1>}, {transform_indices = @transform_2, window_bounds = array<i64: 1, 8, 128>}]} {
    %c0 = arith.constant 0 : index
    %c0_0 = arith.constant 0 : index
    %0 = vector.load %arg1[%c0, %c0_0] : memref<8x32xf32, #tpu.memory_space<vmem>>, vector<8x32xf32>
    %c0_1 = arith.constant 0 : index
    %c0_2 = arith.constant 0 : index
    %1 = vector.load %arg2[%c0_1, %c0_2] : memref<8x1xi32, #tpu.memory_space<vmem>>, vector<8x1xi32>
    %cst = arith.constant dense<0xFF800000> : vector<8xf32>
    %2 = vector.multi_reduction <maximumf>, %0, %cst [1] : vector<8x32xf32> to vector<8xf32>
    %3 = vector.shape_cast %2 : vector<8xf32> to vector<8x1xf32>
    %4 = vector.broadcast %3 : vector<8x1xf32> to vector<8x32xf32>
    %5 = arith.subf %0, %4 : vector<8x32xf32>
    %6 = math.exp %5 : vector<8x32xf32>
    %cst_3 = arith.constant dense<0.000000e+00> : vector<8xf32>
    %7 = vector.multi_reduction <add>, %6, %cst_3 [1] : vector<8x32xf32> to vector<8xf32>
    %8 = vector.shape_cast %7 : vector<8xf32> to vector<8x1xf32>
    %9 = tpu.iota {dimensions = array<i32: 1>} : vector<8x32xi32>
    %10 = vector.broadcast %1 : vector<8x1xi32> to vector<8x32xi32>
    %11 = arith.cmpi eq, %9, %10 : vector<8x32xi32>
    %cst_4 = arith.constant 0.000000e+00 : f32
    %12 = vector.broadcast %cst_4 : f32 to vector<8x32xf32>
    %13 = arith.select %11, %5, %12 : vector<8x32xi1>, vector<8x32xf32>
    %cst_5 = arith.constant dense<0.000000e+00> : vector<8xf32>
    %14 = vector.multi_reduction <add>, %13, %cst_5 [1] : vector<8x32xf32> to vector<8xf32>
    %15 = vector.shape_cast %14 : vector<8xf32> to vector<8x1xf32>
    %16 = tpu.iota {dimensions = array<i32: 0>} : vector<8x1xi32>
    %c8_i32 = arith.constant 8 : i32
    %17 = arith.muli %arg0, %c8_i32 : i32
    %18 = vector.broadcast %17 : i32 to vector<8x1xi32>
    %19 = arith.addi %16, %18 : vector<8x1xi32>
    %c8_i32_6 = arith.constant 8 : i32
    %20 = vector.broadcast %c8_i32_6 : i32 to vector<8x1xi32>
    %21 = arith.cmpi slt, %19, %20 : vector<8x1xi32>
    %22 = math.log %8 : vector<8x1xf32>
    %23 = arith.subf %22, %15 : vector<8x1xf32>
    %cst_7 = arith.constant 0.000000e+00 : f32
    %24 = vector.broadcast %cst_7 : f32 to vector<8x1xf32>
    %25 = arith.select %21, %23, %24 : vector<8x1xi1>, vector<8x1xf32>
    %26 = vector.shape_cast %25 : vector<8x1xf32> to vector<1x8x1xf32>
    %cst_8 = arith.constant dense<0.000000e+00> : vector<1xf32>
    %27 = vector.multi_reduction <add>, %26, %cst_8 [1, 2] : vector<1x8x1xf32> to vector<1xf32>
    %28 = vector.shape_cast %27 : vector<1xf32> to vector<1x1x1xf32>
    %29 = vector.extract %28[0, 0, 0] : f32 from vector<1x1x1xf32>
    %30 = vector.broadcast %29 : f32 to vector<1x8x128xf32>
    %c0_9 = arith.constant 0 : index
    %c0_10 = arith.constant 0 : index
    %c0_11 = arith.constant 0 : index
    %31 = vector.load %arg3[%c0_9, %c0_10, %c0_11] : memref<1x8x128xf32, #tpu.memory_space<vmem>>, vector<1x8x128xf32>
    tpu.vector_store %arg3[%c0_9, %c0_10, %c0_11], %30 {strides = array<i32>} : memref<1x8x128xf32, #tpu.memory_space<vmem>>, vector<1x8x128xf32>,
    return
  }
  func.func @transform_0(%arg0: i32) -> (i32, i32) {
    %c0_i32 = arith.constant 0 : i32
    %c0_i32_0 = arith.constant 0 : i32
    return %arg0, %c0_i32 : i32, i32
  }
  func.func @transform_1(%arg0: i32) -> (i32, i32) {
    %c0_i32 = arith.constant 0 : i32
    %c0_i32_0 = arith.constant 0 : i32
    return %arg0, %c0_i32 : i32, i32
  }
  func.func @transform_2(%arg0: i32) -> (i32, i32, i32) {
    %c0_i32 = arith.constant 0 : i32
    %c0_i32_0 = arith.constant 0 : i32
    %c0_i32_1 = arith.constant 0 : i32
    return %arg0, %c0_i32, %c0_i32_0 : i32, i32, i32
  }
}

</mosaic_0001>

<bundles_post_ra>
// kernel: tpu_custom_call.1
= control target key start
LH: loop header
LB: loop body
LE: loop exit
PB: predicated region body
PF: predicated region fallthrough
CT: control target
= control target key end

     0   :  { %vm14_vm0 = vcmask 261120   ;;  %s137_s0 = inlined_call_operand.vmem [shape: f32[8,32], index: 0, kind: input, shape index: {}]   ;;  %s138_s1 = inlined_call_operand.vmem [shape: s32[8,1], index: 1, kind: input, shape index: {}]   ;;  %s139_s2 = inlined_call_operand.hbm [shape: f32[1,8,128], index: 2, kind: output, shape index: {}]  }
   0x1   :  { %v12_v0 = vld [vmem:[%s137_s0] sm:$0xff] }
   0x2   :  { %7 = vsyncpa [#allocation3], 0  ;;  %v15_v1 = vsel %vm14_vm0, %v12_v0, -inf  ;;  %v108_v2 = vmov 0   ;;  %v13_v3 = vld [vmem:[%s138_s1] sm:$0xff]  ;;  %v24_v9 = vlaneseq  ;;  %vm44_vm2 = vcmask 7168  }
   0x3   :  { %77 = vset.pattern.permute.xlu0 %v108_v2  ;;  %s109_s0 = smov [#allocation2]   ;;  %s64_s15 = sshll.u32 %s139_s2, 4  ;;  %s65_s15 = int_to_ptr.hbm [resolvable:$true] %s64_s15 }
   0x4   :  { %16 = vmax.xlane.f32.xlu0 %v15_v1  ;;  %v25_v10 = vand.u32 127, %v24_v9  ;;  %s62_s1 = sshll.u32 %s109_s0, 4  ;;  %s63_s1 = int_to_ptr.vmem [resolvable:$true] %s62_s1 }
  0x18   :  { %27 = vperm.xlu0 %77, %v13_v3  }
  0x77   :  { %v17_v4 = vpop.xlane.xlu0 %16 }
  0x78   :  { %v18_v5 = vsub.f32 %v12_v0, %v17_v4 }
  0x7a   :  { %v19_v6 = vmul.f32 1.442695, %v18_v5 }
  0x7c   :  { %78 = vpow2.f32 %v19_v6 }
  0x82   :  { %v79_v7 = vpop.eup %78 }
  0x83   :  { %v21_v8 = vsel %vm14_vm0, %v79_v7, 0.0 }
  0x84   :  { %22 = vadd.xlane.f32.xlu1 %v21_v8 }
  0x8a   :  { %v28_v11 = vpop.permute.xlu0 %27 }
  0x8b   :  { %vm29_vm1 = vcmp.eq.s32.totalorder %v25_v10, %v28_v11 }
  0x8c   :  { %v30_v12 = vsel %vm29_vm1, %v18_v5, 0.0 }
  0x8d   :  { %v31_v13 = vsel %vm14_vm0, %v30_v12, 0.0 }
  0x8e   :  { %32 = vadd.xlane.f32.xlu1 %v31_v13 }
  0xf7   :  { %v23_v14 = vpop.xlane.xlu1 %22 }
  0xf8   :  { %80 = vlog2.f32 %v23_v14 }
  0xfe   :  { %v81_v15 = vpop.eup %80 }
  0xff   :  { %v41_v16 = vmul.f32 0.6931472, %v81_v15 }
 0x101   :  { %v33_v17 = vpop.xlane.xlu1 %32 }
 0x102   :  { %v42_v18 = vsub.f32 %v41_v16, %v33_v17 }
 0x104   :  { %v45_v19 = vsel %vm44_vm2, %v42_v18, 0.0 }
 0x105   :  { %46 = vadd.xlane.f32.xlu2 %v45_v19 }
 0x178   :  { %v47_v20 = vpop.xlane.xlu2 %46 }
 0x179   :  { %v48_v21 = vrot.slane %v47_v20, 4 }
 0x17b   :  { %v49_v22 = vadd.f32 %v48_v21, %v47_v20 }
 0x17d   :  { %v50_v23 = vrot.slane %v49_v22, 2 }
 0x17f   :  { %v51_v24 = vadd.f32 %v50_v23, %v49_v22 }
 0x181   :  { %v52_v25 = vrot.slane %v51_v24, 1 }
 0x183   :  { %v53_v26 = vadd.f32 %v52_v25, %v51_v24 }
 0x185   :  { %73 = vpush %v53_v26 }
 0x1b6   :  { %s74_s16 = spop %73 }
 0x1b7   :  { %v55_v27 = vstv %s74_s16 }
 0x1b8   :  { %56 = vst [vmem:[#allocation2] sm:$0xff] %v55_v27 }
 0x1b9   :  { %67 = dma.vmem_to_hbm [thread:$0]  %s63_s1, 128, %s65_s15, [#allocation3]  }
 0x1ba   :  { %106 = dma.done.wait [#allocation3], 128  }
 0x1bb   :  { %107 = vsyncadd [#allocation3], 4294967168 }
 0x1bc   :  { %72 = vsyncpa [#allocation3], 1 }

</bundles_post_ra>
